<compile_context>
chip_gen: v6e
topology: v6e:2x2x1
jax: 0.10.0
libtpu: 0.0.40
codegen_flags: <defaults>
</compile_context>

<pallas_src>
import math
import functools

import jax
import jax.numpy as jnp
from jax import lax
from jax.experimental import pallas as pl
from jax.experimental.pallas import tpu as pltpu


def _mha_kernel(xq_ref, kt_ref, v_ref, wq_ref, bq_ref, wo_ref, bo_ref,
                *refs, num_heads: int, need_weights: bool):
    if need_weights:
        out_ref, attnw_ref, acc_ref, wacc_ref = refs
    else:
        out_ref, acc_ref = refs
        attnw_ref = None
        wacc_ref = None

    xq = xq_ref[0]                                    # (TLq, E) bf16

    acc_ref[...] = jnp.zeros_like(acc_ref)
    if need_weights:
        wacc_ref[...] = jnp.zeros_like(wacc_ref)

    def head_body(h, carry):
        # Per-head Q projection (1/sqrt(Dh) scale + bias folded into wq/bq).
        qh = jnp.dot(xq, wq_ref[h],
                     preferred_element_type=jnp.float32) + bq_ref[h]        # (TLq, Dh) f32
        # Scores: K arrives pre-transposed per head (Dh, Lk) -> plain NN dot.
        s = jnp.dot(qh.astype(jnp.bfloat16), kt_ref[h],
                    preferred_element_type=jnp.float32)                     # (TLq, Lk) f32
        # Softmax in f32 with max subtraction; exact normalization.
        m = jnp.max(s, axis=-1, keepdims=True)
        e = jnp.exp(s - m)
        p = e * (1.0 / jnp.sum(e, axis=-1, keepdims=True))                  # (TLq, Lk) f32
        # PV and this head's slice of the output projection (bf16 ops, f32 acc).
        oh = jnp.dot(p.astype(jnp.bfloat16), v_ref[h],
                     preferred_element_type=jnp.float32)                    # (TLq, Dh) f32
        acc_ref[...] += jnp.dot(oh.astype(jnp.bfloat16), wo_ref[h],
                                preferred_element_type=jnp.float32)         # (TLq, E) f32
        if need_weights:
            wacc_ref[...] += p
        return carry

    lax.fori_loop(0, num_heads, head_body, 0)

    out_ref[0] = (acc_ref[...] + bo_ref[...]).astype(out_ref.dtype)
    if need_weights:
        attnw_ref[0] = (wacc_ref[...] * (1.0 / num_heads)).astype(attnw_ref.dtype)


def _choose_q_tile(lq, lk, e, h, *, budget_bytes=16 * 1024 * 1024):
    """Largest query tile (<=512) dividing Lq whose per-step VMEM fits a
    conservative budget (safe for the default scoped VMEM on all generations)."""
    dh = e // h
    # VMEM that does not scale with the query tile (x2 for double buffering).
    fixed = 2 * (2 * lk * e * 2)                                   # K^T + V (bf16)
    fixed += 2 * (2 * e * e * 2 + e * 4 + h * dh * 4 + e * 4)      # Wq/Wo (bf16) + biases (f32)
    cands = [t for t in (512, 256, 128, 64, 32, 16, 8) if t <= lq and lq % t == 0]
    if not cands:
        return lq
    for t in cands:
        var = 2 * (t * e * 2)                                      # query tile (bf16)
        var += 2 * (t * e * 4 + t * lk * 4)                        # outputs
        var += t * e * 4 + t * lk * 4                              # f32 scratch accumulators
        if fixed + var <= budget_bytes:
            return t
    return cands[-1]


def multi_head_attention(x, y, z, params, *, num_heads: int, need_weights: bool = True):
    """x: query (B, Lq, E); y: key (B, Lk, E); z: value (B, Lk, E).

    params: dict with in_proj_weight (3E, E), in_proj_bias (3E,),
            out_proj_weight (E, E), out_proj_bias (E,).
    Returns (attn_output (B, Lq, E), attn_weights (B, Lq, Lk) or None).
    """
    B, Lq, E = x.shape
    _, Lk, _ = y.shape
    assert E % num_heads == 0
    Dh = E // num_heads
    scale = 1.0 / math.sqrt(Dh)

    ipw = params["in_proj_weight"]      # (3E, E)
    ipb = params["in_proj_bias"]        # (3E,)
    wq, wk, wv = ipw[:E], ipw[E:2 * E], ipw[2 * E:]
    bq, bk, bv = ipb[:E], ipb[E:2 * E], ipb[2 * E:]
    wo = params["out_proj_weight"]      # (E, E)
    bo = params["out_proj_bias"]        # (E,)

    f32 = jnp.float32
    bf16 = jnp.bfloat16

    # K/V projections computed once here (f32, bias folded), then laid out
    # head-major so the kernel only does leading-axis slices.  K is stored
    # transposed per head -> (B*H, Dh, Lk); V -> (B*H, Lk, Dh).
    k_proj = (y.astype(f32) @ wk.T.astype(f32) + bk.astype(f32))           # (B, Lk, E)
    v_proj = (z.astype(f32) @ wv.T.astype(f32) + bv.astype(f32))           # (B, Lk, E)
    k_t = k_proj.reshape(B, Lk, num_heads, Dh).transpose(0, 2, 3, 1)
    k_t = k_t.reshape(B * num_heads, Dh, Lk).astype(bf16)
    v_h = v_proj.reshape(B, Lk, num_heads, Dh).transpose(0, 2, 1, 3)
    v_h = v_h.reshape(B * num_heads, Lk, Dh).astype(bf16)

    # Head-major, pre-transposed Q / O weights; 1/sqrt(Dh) folded into Wq, bq.
    wq_h = (wq * scale).reshape(num_heads, Dh, E).transpose(0, 2, 1).astype(bf16)   # (H, E, Dh)
    wo_h = wo.reshape(E, num_heads, Dh).transpose(1, 2, 0).astype(bf16)             # (H, Dh, E)
    bq_h = (bq * scale).reshape(num_heads, 1, Dh).astype(f32)                       # (H, 1, Dh)
    bo_2 = bo.reshape(1, E).astype(f32)                                             # (1, E)

    x_q = x.astype(bf16)

    tq = _choose_q_tile(Lq, Lk, E, num_heads)
    nq = Lq // tq

    kernel = functools.partial(_mha_kernel, num_heads=num_heads,
                               need_weights=need_weights)

    q_block = lambda b, qi: (b, qi, 0)     # query / outputs: tile over (B, Lq)
    kv_block = lambda b, qi: (b, 0, 0)     # head-major K/V: full per batch
    w3 = lambda b, qi: (0, 0, 0)           # grid-invariant 3-D weights
    w2 = lambda b, qi: (0, 0)              # grid-invariant 2-D bias

    in_specs = [
        pl.BlockSpec((1, tq, E), q_block),                 # x (query), bf16
        pl.BlockSpec((num_heads, Dh, Lk), kv_block),       # K^T, head-major, bf16
        pl.BlockSpec((num_heads, Lk, Dh), kv_block),       # V,   head-major, bf16
        pl.BlockSpec((num_heads, E, Dh), w3),              # Wq^T (scaled), head-major
        pl.BlockSpec((num_heads, 1, Dh), w3),              # bq (scaled), f32
        pl.BlockSpec((num_heads, Dh, E), w3),              # Wo^T, head-major
        pl.BlockSpec((1, E), w2),                          # bo, f32
    ]

    out_shapes = [jax.ShapeDtypeStruct((B, Lq, E), x.dtype)]
    out_specs = [pl.BlockSpec((1, tq, E), q_block)]
    scratch = [pltpu.VMEM((tq, E), f32)]
    if need_weights:
        out_shapes.append(jax.ShapeDtypeStruct((B, Lq, Lk), f32))
        out_specs.append(pl.BlockSpec((1, tq, Lk), q_block))
        scratch.append(pltpu.VMEM((tq, Lk), f32))

    # Advisory cost estimate so XLA schedules wrapper-side projections around it.
    flops = 4 * B * Lq * E * (E + Lk)
    transcendentals = B * num_heads * Lq * Lk
    bytes_accessed = (B * Lq * E * 2 + 2 * B * Lk * E * 2 + 2 * E * E * 2
                      + B * Lq * E * 4 + (B * Lq * Lk * 4 if need_weights else 0))

    res = pl.pallas_call(
        kernel,
        out_shape=tuple(out_shapes),
        grid_spec=pltpu.PrefetchScalarGridSpec(
            num_scalar_prefetch=0,
            grid=(B, nq),
            in_specs=in_specs,
            out_specs=out_specs,
            scratch_shapes=scratch,
        ),
        compiler_params=pltpu.CompilerParams(
            dimension_semantics=("parallel", "parallel")),
        cost_estimate=pl.CostEstimate(flops=flops,
                                      transcendentals=transcendentals,
                                      bytes_accessed=bytes_accessed),
    )(x_q, k_t, v_h, wq_h, bq_h, wo_h, bo_2)

    if need_weights:
        out, attn_w = res
        return out, attn_w
    (out,) = res
    return out, None


def _reference(x, y, z, params, *, num_heads: int):
    """Pure-JAX reference mirroring nn.MultiheadAttention forward (no mask)."""
    B, Lq, E = x.shape
    _, Lk, _ = y.shape
    Dh = E // num_heads
    ipw, ipb = params["in_proj_weight"], params["in_proj_bias"]
    wq, wk, wv = ipw[:E], ipw[E:2 * E], ipw[2 * E:]
    bq, bk, bv = ipb[:E], ipb[E:2 * E], ipb[2 * E:]
    q = x @ wq.T + bq
    k = y @ wk.T + bk
    v = z @ wv.T + bv
    q = q.reshape(B, Lq, num_heads, Dh).transpose(0, 2, 1, 3)
    k = k.reshape(B, Lk, num_heads, Dh).transpose(0, 2, 1, 3)
    v = v.reshape(B, Lk, num_heads, Dh).transpose(0, 2, 1, 3)
    s = jnp.einsum("bhqd,bhkd->bhqk", q, k) / math.sqrt(Dh)
    p = jax.nn.softmax(s, axis=-1)
    o = jnp.einsum("bhqk,bhkd->bhqd", p, v)
    o = o.transpose(0, 2, 1, 3).reshape(B, Lq, E)
    o = o @ params["out_proj_weight"].T + params["out_proj_bias"]
    return o, p.mean(axis=1)


if __name__ == "__main__":
    # Small shapes consistent with the module's forward.
    B, L, E, H = 2, 8, 32, 4

    key = jax.random.PRNGKey(0)
    kx, ky, kz, k1, k2, k3, k4 = jax.random.split(key, 7)

    x = jax.random.normal(kx, (B, L, E), dtype=jnp.float32)   # query
    y = jax.random.normal(ky, (B, L, E), dtype=jnp.float32)   # key
    z = jax.random.normal(kz, (B, L, E), dtype=jnp.float32)   # value

    params = {
        "in_proj_weight": jax.random.normal(k1, (3 * E, E), dtype=jnp.float32) * 0.1,
        "in_proj_bias":   jax.random.normal(k2, (3 * E,), dtype=jnp.float32) * 0.1,
        "out_proj_weight": jax.random.normal(k3, (E, E), dtype=jnp.float32) * 0.1,
        "out_proj_bias":   jax.random.normal(k4, (E,), dtype=jnp.float32) * 0.1,
    }

    out, attn_w = multi_head_attention(x, y, z, params, num_heads=H)
    jax.block_until_ready(out)
    jax.block_until_ready(attn_w)

    ref_out, ref_w = _reference(x, y, z, params, num_heads=H)
    # Tolerances account for bf16 MXU operands (f32 accumulation, f32 softmax).
    assert jnp.allclose(out, ref_out, atol=3e-2, rtol=3e-2), "attn_output mismatch"
    assert jnp.allclose(attn_w, ref_w, atol=2e-2, rtol=2e-2), "attn_weights mismatch"

    print("KERNEL_OK")
</pallas_src>

<mosaic_0001>
module attributes {stable_mosaic.version = 11 : i64} {
  func.func @_mha_kernel(%arg0: i32, %arg1: i32, %arg2: memref<1x8x32xbf16, #tpu.memory_space<vmem>>, %arg3: memref<4x8x8xbf16, #tpu.memory_space<vmem>>, %arg4: memref<4x8x8xbf16, #tpu.memory_space<vmem>>, %arg5: memref<4x32x8xbf16, #tpu.memory_space<vmem>>, %arg6: memref<4x1x8xf32, #tpu.memory_space<vmem>>, %arg7: memref<4x8x32xbf16, #tpu.memory_space<vmem>>, %arg8: memref<1x32xf32, #tpu.memory_space<vmem>>, %arg9: memref<1x8x32xf32, #tpu.memory_space<vmem>>, %arg10: memref<1x8x8xf32, #tpu.memory_space<vmem>>, %arg11: memref<8x32xf32, #tpu.memory_space<vmem>>, %arg12: memref<8x8xf32, #tpu.memory_space<vmem>>) attributes {dimension_semantics = [#tpu.dimension_semantics<parallel>, #tpu.dimension_semantics<parallel>], iteration_bounds = array<i64: 2, 1>, scalar_prefetch = 0 : i64, scratch_operands = 2 : i64, tpu.core_type = #tpu.core_type<tc>, window_params = [{transform_indices = @transform_0, window_bounds = array<i64: 1, 8, 32>}, {transform_indices = @transform_1, window_bounds = array<i64: 4, 8, 8>}, {transform_indices = @transform_2, window_bounds = array<i64: 4, 8, 8>}, {pipeline_mode = #tpu.pipeline_mode<synchronous>, transform_indices = @transform_3, window_bounds = array<i64: 4, 32, 8>}, {pipeline_mode = #tpu.pipeline_mode<synchronous>, transform_indices = @transform_4, window_bounds = array<i64: 4, 1, 8>}, {pipeline_mode = #tpu.pipeline_mode<synchronous>, transform_indices = @transform_5, window_bounds = array<i64: 4, 8, 32>}, {pipeline_mode = #tpu.pipeline_mode<synchronous>, transform_indices = @transform_6, window_bounds = array<i64: 1, 32>}, {transform_indices = @transform_7, window_bounds = array<i64: 1, 8, 32>}, {transform_indices = @transform_8, window_bounds = array<i64: 1, 8, 8>}]} {
    %c0 = arith.constant 0 : index
    %c0_0 = arith.constant 0 : index
    %c0_1 = arith.constant 0 : index
    %0 = vector.load %arg2[%c0, %c0_0, %c0_1] : memref<1x8x32xbf16, #tpu.memory_space<vmem>>, vector<1x8x32xbf16>
    %1 = vector.shape_cast %0 : vector<1x8x32xbf16> to vector<8x32xbf16>
    %cst = arith.constant 0.000000e+00 : f32
    %2 = vector.broadcast %cst : f32 to vector<8x32xf32>
    %c0_2 = arith.constant 0 : index
    %c0_3 = arith.constant 0 : index
    %3 = vector.load %arg11[%c0_2, %c0_3] : memref<8x32xf32, #tpu.memory_space<vmem>>, vector<8x32xf32>
    tpu.vector_store %arg11[%c0_2, %c0_3], %2 {strides = array<i32>} : memref<8x32xf32, #tpu.memory_space<vmem>>, vector<8x32xf32>,
    %cst_4 = arith.constant 0.000000e+00 : f32
    %4 = vector.broadcast %cst_4 : f32 to vector<8x8xf32>
    %c0_5 = arith.constant 0 : index
    %c0_6 = arith.constant 0 : index
    %5 = vector.load %arg12[%c0_5, %c0_6] : memref<8x8xf32, #tpu.memory_space<vmem>>, vector<8x8xf32>
    tpu.vector_store %arg12[%c0_5, %c0_6], %4 {strides = array<i32>} : memref<8x8xf32, #tpu.memory_space<vmem>>, vector<8x8xf32>,
    %c0_i32 = arith.constant 0 : i32
    %c4_i32 = arith.constant 4 : i32
    %6 = arith.addi %c0_i32, %c4_i32 : i32
    %c1_i32 = arith.constant 1 : i32
    scf.for %arg13 = %c0_i32 to %6 step %c1_i32  : i32 {
      %20 = arith.index_cast %arg13 : i32 to index
      %c0_21 = arith.constant 0 : index
      %c0_22 = arith.constant 0 : index
      %21 = vector.load %arg5[%20, %c0_21, %c0_22] : memref<4x32x8xbf16, #tpu.memory_space<vmem>>, vector<1x32x8xbf16>
      %22 = vector.shape_cast %21 : vector<1x32x8xbf16> to vector<32x8xbf16>
      %cst_23 = arith.constant dense<0.000000e+00> : vector<8x8xf32>
      %23 = tpu.matmul %1, %22, %cst_23 {dimension_numbers = #tpu.dot_dimension_numbers<[1], [0], [0], [1], [0, 0, 1, 1], [], []>} : vector<8x32xbf16>, vector<32x8xbf16>, vector<8x8xf32> -> vector<8x8xf32>
      %24 = arith.index_cast %arg13 : i32 to index
      %c0_24 = arith.constant 0 : index
      %c0_25 = arith.constant 0 : index
      %25 = vector.load %arg6[%24, %c0_24, %c0_25] : memref<4x1x8xf32, #tpu.memory_space<vmem>>, vector<1x1x8xf32>
      %26 = vector.shape_cast %25 : vector<1x1x8xf32> to vector<1x8xf32>
      %27 = vector.broadcast %26 : vector<1x8xf32> to vector<8x8xf32>
      %28 = arith.addf %23, %27 : vector<8x8xf32>
      %29 = arith.truncf %28 : vector<8x8xf32> to vector<8x8xbf16>
      %30 = arith.index_cast %arg13 : i32 to index
      %c0_26 = arith.constant 0 : index
      %c0_27 = arith.constant 0 : index
      %31 = vector.load %arg3[%30, %c0_26, %c0_27] : memref<4x8x8xbf16, #tpu.memory_space<vmem>>, vector<1x8x8xbf16>
      %32 = vector.shape_cast %31 : vector<1x8x8xbf16> to vector<8x8xbf16>
      %cst_28 = arith.constant dense<0.000000e+00> : vector<8x8xf32>
      %33 = tpu.matmul %29, %32, %cst_28 {dimension_numbers = #tpu.dot_dimension_numbers<[1], [0], [0], [1], [0, 0, 1, 1], [], []>} : vector<8x8xbf16>, vector<8x8xbf16>, vector<8x8xf32> -> vector<8x8xf32>
      %cst_29 = arith.constant dense<0xFF800000> : vector<8xf32>
      %34 = vector.multi_reduction <maximumf>, %33, %cst_29 [1] : vector<8x8xf32> to vector<8xf32>
      %35 = vector.shape_cast %34 : vector<8xf32> to vector<8x1xf32>
      %36 = vector.broadcast %35 : vector<8x1xf32> to vector<8x8xf32>
      %37 = arith.subf %33, %36 : vector<8x8xf32>
      %38 = math.exp %37 : vector<8x8xf32>
      %cst_30 = arith.constant dense<0.000000e+00> : vector<8xf32>
      %39 = vector.multi_reduction <add>, %38, %cst_30 [1] : vector<8x8xf32> to vector<8xf32>
      %40 = vector.shape_cast %39 : vector<8xf32> to vector<8x1xf32>
      %cst_31 = arith.constant 1.000000e+00 : f32
      %41 = vector.broadcast %cst_31 : f32 to vector<8x1xf32>
      %42 = arith.divf %41, %40 : vector<8x1xf32>
      %43 = vector.broadcast %42 : vector<8x1xf32> to vector<8x8xf32>
      %44 = arith.mulf %38, %43 : vector<8x8xf32>
      %45 = arith.truncf %44 : vector<8x8xf32> to vector<8x8xbf16>
      %46 = arith.index_cast %arg13 : i32 to index
      %c0_32 = arith.constant 0 : index
      %c0_33 = arith.constant 0 : index
      %47 = vector.load %arg4[%46, %c0_32, %c0_33] : memref<4x8x8xbf16, #tpu.memory_space<vmem>>, vector<1x8x8xbf16>
      %48 = vector.shape_cast %47 : vector<1x8x8xbf16> to vector<8x8xbf16>
      %cst_34 = arith.constant dense<0.000000e+00> : vector<8x8xf32>
      %49 = tpu.matmul %45, %48, %cst_34 {dimension_numbers = #tpu.dot_dimension_numbers<[1], [0], [0], [1], [0, 0, 1, 1], [], []>} : vector<8x8xbf16>, vector<8x8xbf16>, vector<8x8xf32> -> vector<8x8xf32>
      %c0_35 = arith.constant 0 : index
      %c0_36 = arith.constant 0 : index
      %50 = vector.load %arg11[%c0_35, %c0_36] : memref<8x32xf32, #tpu.memory_space<vmem>>, vector<8x32xf32>
      %51 = arith.truncf %49 : vector<8x8xf32> to vector<8x8xbf16>
      %52 = arith.index_cast %arg13 : i32 to index
      %c0_37 = arith.constant 0 : index
      %c0_38 = arith.constant 0 : index
      %53 = vector.load %arg7[%52, %c0_37, %c0_38] : memref<4x8x32xbf16, #tpu.memory_space<vmem>>, vector<1x8x32xbf16>
      %54 = vector.shape_cast %53 : vector<1x8x32xbf16> to vector<8x32xbf16>
      %cst_39 = arith.constant dense<0.000000e+00> : vector<8x32xf32>
      %55 = tpu.matmul %51, %54, %cst_39 {dimension_numbers = #tpu.dot_dimension_numbers<[1], [0], [0], [1], [0, 0, 1, 1], [], []>} : vector<8x8xbf16>, vector<8x32xbf16>, vector<8x32xf32> -> vector<8x32xf32>
      %56 = arith.addf %50, %55 : vector<8x32xf32>
      %c0_40 = arith.constant 0 : index
      %c0_41 = arith.constant 0 : index
      %57 = vector.load %arg11[%c0_40, %c0_41] : memref<8x32xf32, #tpu.memory_space<vmem>>, vector<8x32xf32>
      tpu.vector_store %arg11[%c0_40, %c0_41], %56 {strides = array<i32>} : memref<8x32xf32, #tpu.memory_space<vmem>>, vector<8x32xf32>,
      %c0_42 = arith.constant 0 : index
      %c0_43 = arith.constant 0 : index
      %58 = vector.load %arg12[%c0_42, %c0_43] : memref<8x8xf32, #tpu.memory_space<vmem>>, vector<8x8xf32>
      %59 = arith.addf %58, %44 : vector<8x8xf32>
      %c0_44 = arith.constant 0 : index
      %c0_45 = arith.constant 0 : index
      %60 = vector.load %arg12[%c0_44, %c0_45] : memref<8x8xf32, #tpu.memory_space<vmem>>, vector<8x8xf32>
      tpu.vector_store %arg12[%c0_44, %c0_45], %59 {strides = array<i32>} : memref<8x8xf32, #tpu.memory_space<vmem>>, vector<8x8xf32>,
    }
    %c4_i32_7 = arith.constant 4 : i32
    %c0_8 = arith.constant 0 : index
    %c0_9 = arith.constant 0 : index
    %7 = vector.load %arg11[%c0_8, %c0_9] : memref<8x32xf32, #tpu.memory_space<vmem>>, vector<8x32xf32>
    %c0_10 = arith.constant 0 : index
    %c0_11 = arith.constant 0 : index
    %8 = vector.load %arg8[%c0_10, %c0_11] : memref<1x32xf32, #tpu.memory_space<vmem>>, vector<1x32xf32>
    %9 = vector.broadcast %8 : vector<1x32xf32> to vector<8x32xf32>
    %10 = arith.addf %7, %9 : vector<8x32xf32>
    %c0_12 = arith.constant 0 : index
    %c0_13 = arith.constant 0 : index
    %c0_14 = arith.constant 0 : index
    %11 = vector.load %arg9[%c0_12, %c0_13, %c0_14] : memref<1x8x32xf32, #tpu.memory_space<vmem>>, vector<1x8x32xf32>
    %12 = vector.shape_cast %11 : vector<1x8x32xf32> to vector<8x32xf32>
    %13 = vector.shape_cast %10 : vector<8x32xf32> to vector<1x8x32xf32>
    tpu.vector_store %arg9[%c0_12, %c0_13, %c0_14], %13 {strides = array<i32>} : memref<1x8x32xf32, #tpu.memory_space<vmem>>, vector<1x8x32xf32>,
    %c0_15 = arith.constant 0 : index
    %c0_16 = arith.constant 0 : index
    %14 = vector.load %arg12[%c0_15, %c0_16] : memref<8x8xf32, #tpu.memory_space<vmem>>, vector<8x8xf32>
    %cst_17 = arith.constant 2.500000e-01 : f32
    %15 = vector.broadcast %cst_17 : f32 to vector<8x8xf32>
    %16 = arith.mulf %14, %15 : vector<8x8xf32>
    %c0_18 = arith.constant 0 : index
    %c0_19 = arith.constant 0 : index
    %c0_20 = arith.constant 0 : index
    %17 = vector.load %arg10[%c0_18, %c0_19, %c0_20] : memref<1x8x8xf32, #tpu.memory_space<vmem>>, vector<1x8x8xf32>
    %18 = vector.shape_cast %17 : vector<1x8x8xf32> to vector<8x8xf32>
    %19 = vector.shape_cast %16 : vector<8x8xf32> to vector<1x8x8xf32>
    tpu.vector_store %arg10[%c0_18, %c0_19, %c0_20], %19 {strides = array<i32>} : memref<1x8x8xf32, #tpu.memory_space<vmem>>, vector<1x8x8xf32>,
    return
  }
  func.func @transform_0(%arg0: i32, %arg1: i32) -> (i32, i32, i32) {
    %c0_i32 = arith.constant 0 : i32
    %c0_i32_0 = arith.constant 0 : i32
    return %arg0, %arg1, %c0_i32 : i32, i32, i32
  }
  func.func @transform_1(%arg0: i32, %arg1: i32) -> (i32, i32, i32) {
    %c0_i32 = arith.constant 0 : i32
    %c0_i32_0 = arith.constant 0 : i32
    %c0_i32_1 = arith.constant 0 : i32
    return %arg0, %c0_i32, %c0_i32_0 : i32, i32, i32
  }
  func.func @transform_2(%arg0: i32, %arg1: i32) -> (i32, i32, i32) {
    %c0_i32 = arith.constant 0 : i32
    %c0_i32_0 = arith.constant 0 : i32
    %c0_i32_1 = arith.constant 0 : i32
    return %arg0, %c0_i32, %c0_i32_0 : i32, i32, i32
  }
  func.func @transform_3(%arg0: i32, %arg1: i32) -> (i32, i32, i32) {
    %c0_i32 = arith.constant 0 : i32
    %c0_i32_0 = arith.constant 0 : i32
    %c0_i32_1 = arith.constant 0 : i32
    %c0_i32_2 = arith.constant 0 : i32
    return %c0_i32, %c0_i32_0, %c0_i32_1 : i32, i32, i32
  }
  func.func @transform_4(%arg0: i32, %arg1: i32) -> (i32, i32, i32) {
    %c0_i32 = arith.constant 0 : i32
    %c0_i32_0 = arith.constant 0 : i32
    %c0_i32_1 = arith.constant 0 : i32
    %c0_i32_2 = arith.constant 0 : i32
    return %c0_i32, %c0_i32_0, %c0_i32_1 : i32, i32, i32
  }
  func.func @transform_5(%arg0: i32, %arg1: i32) -> (i32, i32, i32) {
    %c0_i32 = arith.constant 0 : i32
    %c0_i32_0 = arith.constant 0 : i32
    %c0_i32_1 = arith.constant 0 : i32
    %c0_i32_2 = arith.constant 0 : i32
    return %c0_i32, %c0_i32_0, %c0_i32_1 : i32, i32, i32
  }
  func.func @transform_6(%arg0: i32, %arg1: i32) -> (i32, i32) {
    %c0_i32 = arith.constant 0 : i32
    %c0_i32_0 = arith.constant 0 : i32
    %c0_i32_1 = arith.constant 0 : i32
    return %c0_i32, %c0_i32_0 : i32, i32
  }
  func.func @transform_7(%arg0: i32, %arg1: i32) -> (i32, i32, i32) {
    %c0_i32 = arith.constant 0 : i32
    %c0_i32_0 = arith.constant 0 : i32
    return %arg0, %arg1, %c0_i32 : i32, i32, i32
  }
  func.func @transform_8(%arg0: i32, %arg1: i32) -> (i32, i32, i32) {
    %c0_i32 = arith.constant 0 : i32
    %c0_i32_0 = arith.constant 0 : i32
    return %arg0, %arg1, %c0_i32 : i32, i32, i32
  }
}

</mosaic_0001>

<bundles_post_ra>
// kernel: tpu_custom_call.1
= control target key start
LH: loop header
LB: loop body
LE: loop exit
PB: predicated region body
PF: predicated region fallthrough
CT: control target
= control target key end

     0   :  { %s1436_s0 = inlined_call_operand.hbm [shape: bf16[2,8,32], index: 0, kind: input, shape index: {}]   ;;  %s1437_s1 = inlined_call_operand.vmem [shape: bf16[8,8,8], index: 1, kind: input, shape index: {}]   ;;  %s1438_s2 = inlined_call_operand.vmem [shape: bf16[8,8,8], index: 2, kind: input, shape index: {}]   ;;  %s1439_s3 = inlined_call_operand.vmem [shape: bf16[4,32,8], index: 3, kind: input, shape index: {}]   ;;  %s1440_s4 = inlined_call_operand.vmem [shape: f32[4,1,8], index: 4, kind: input, shape index: {}]   ;;  %s1441_s5 = inlined_call_operand.vmem [shape: bf16[4,8,32], index: 5, kind: input, shape index: {}]   ;;  %s1442_s6 = inlined_call_operand.vmem [shape: f32[1,32], index: 6, kind: input, shape index: {}]   ;;  %s1443_s7 = inlined_call_operand.hbm [shape: f32[2,8,32], index: 7, kind: output, shape index: {0}]   ;;  %s1444_s8 = inlined_call_operand.hbm [shape: f32[2,8,8], index: 8, kind: output, shape index: {1}]  }
   0x1   :  { %1446 = sst [smem:[#allocation14_spill]] %s1436_s0 }
   0x2   :  { %14 = vsyncpa [#allocation5], 0 }
   0x3   :  { %16 = vsyncpa [#allocation5 + $0x1], 0 }
   0x4   :  { %17 = vsyncpa [#allocation6], 0 }
   0x5   :  { %19 = vsyncpa [#allocation6 + $0x1], 0 }
   0x6   :  { %20 = vsyncpa [#allocation9], 0 }
   0x7   :  { %22 = vsyncpa [#allocation9 + $0x1], 0  ;;  %s1196_s27 = smov 0   ;;  %s1198_s28 = smov 0  }
   0x8   :  { %s1200_s29 = smov 0   ;;  %s1202_s30 = smov 0  }
   0x9   :  { %s1204_s9 = smov 0   ;;  %s1206_s10 = smov 0  }
   0xa LB: > { %s844_s11 = sadd.s32 4294967295, %s1139_s10   ;;  %s845_s12 = sadd.s32 4294967294, %s1139_s10   ;;  %s1139_s10 = sphi %s1206_s10, %s28_s10   ;;  %s1135_s9 = sphi %s1204_s9, %s1461_s9   ;;  %s1131_s30 = sphi %s1202_s30, %s1460_s30   ;;  %s1127_s29 = sphi %s1200_s29, %s1459_s29   ;;  %s1123_s28 = sphi %s1198_s28, %s1458_s28   ;;  %s1119_s27 = sphi %s1196_s27, %s1457_s27  }
   0xb   : > { %s40_s13 = sadd.s32 1, %s1135_s9  ;;  %s49_s14 = sadd.s32 1, %s1127_s29 }
   0xc   : > { %p42_p0 = scmp.ge.s32.totalorder %s40_s13, 2  ;;  %p56_p1 = scmp.ne.s32.totalorder %s1127_s29, %s1123_s28 }
   0xd   : > { %p57_p2 = scmp.eq.s32.totalorder %s1139_s10, 0  ;;  %p62_p3 = scmp.ne.s32.totalorder %s1123_s28, %s1119_s27 }
   0xe   : > { %s1463_s13 = smov (%p42_p0, %s40_s13), 0  ;;  %p63_p5 = scmp.eq.s32.totalorder %s844_s11, 0 }
   0xf   : > { %1447 = sst [smem:[#allocation13_spill]] %s1463_s13  ;;  %p1237_p4 = por %p57_p2, %p56_p1 }
  0x10   : > { %s44_s16 = ssub.s32 %s1135_s9, %s1463_s13  ;;  %p224_p6 = scmp.eq.s32.totalorder %s844_s11, 1 }
  0x11   : > { %p47_p7 = scmp.eq.s32.totalorder %s44_s16, 0  ;;  %p1243_p8 = por %p63_p5, %p62_p3 }
  0x12   : > { %p1247_p9 = por %p224_p6, %p56_p1  ;;  %p230_p10 = scmp.eq.s32.totalorder %s845_s12, 1 }
  0x13   : > { %s1252_s19 = scalar_select %p47_p7, %s1127_s29, %s49_s14  }
  0x14   : > { %p1254_p11 = por %p230_p10, %p62_p3  ;;  %p930_p13 = scmp.lt.s32.totalorder %s1139_s10, 2 }
  0x15   : > { %s290_s21 = sand.u32 1, %s1127_s29   ;;  %s849_s23 = sshll.u32 %s1135_s9, 6 }
  0x16   : > { %s1451_s20 = scalar_select %p1254_p11, 1, 0 }
  0x17   : > { %s848_s22 = sshll.u32 %s290_s21, 2  ;;  %s1452_s0 = sld [smem:[#allocation14_spill]] }
  0x18   : > { %s294_s11 = scalar_lea.vmem [#allocation4], %s848_s22  ;;  %p1267_p0 = pnand %p930_p13, %p1237_p4 }
  0x19   : > { %s302_s16 = sshll.u32 %s294_s11, 4  ;;  %p850_p1 = scmp.ge.s32.totalorder %s1139_s10, 1  ;;  %s303_s16 = int_to_ptr.vmem [resolvable:$true] %s302_s16 }
  0x1a   : > { %p325_p2 = scmp.lt.s32.totalorder %s1139_s10, 3  ;;  %s291_s14 = scalar_lea.sflag [#allocation5], %s290_s21 }
  0x1b   : > { %p999_p3 = pneg %p1267_p0  ;;  %s1010_s13 = scalar_lea.vmem %s303_s16, 64 }
  0x1c   : > { %p1011_p5 = scmp.ne.s32.totalorder %s303_s16, %s1010_s13  ;;  %s1145_s24 = smov [#allocation4]  }
  0x1d   : > { %s300_s26 = scalar_lea.hbm %s1452_s0, %s849_s23  ;;  %s1015_s23 = sshll.u32 %s1145_s24, 4  ;;  %s1016_s23 = int_to_ptr.vmem [resolvable:$false] %s1015_s23 }
  0x1e   : > { %p1013_p6 = pnand %p1011_p5, %p999_p3  ;;  %s1017_s22 = scalar_lea.vmem %s1016_s23, 128 }
  0x1f   : > { %p1018_p10 = scmp.lt.s32.totalorder %s303_s16, %s1016_s23  ;;  %p1019_p12 = scmp.lt.s32.totalorder %s1017_s22, %s1010_s13 }
  0x20   : > { %p1014_p7 = pneg %p1013_p6 }
  0x21   : > { %p1020_p4 = por %p1019_p12, %p1018_p10 }
  0x23   : > { %p1021_p13 = pnand %p1020_p4, %p1014_p7 }
  0x25   : > { %1024 = shalt.err (!%p1021_p13)
}
  0x26   : > { %922 = dma.hbm_to_vmem [thread:$0]  (!%p1267_p0), %s300_s26, 64, %s303_s16, %s291_s14  }
  0x27   : > { %p326_p11 = pnand %p850_p1, %p325_p2 }
  0x28   : > { %s1282_s15 = sand.u32 (!%p326_p11), 1, %s1123_s28  }
  0x29   : > { %329 = sbr.rel (%p326_p11) target bundleno = 1202 (0x4b2), region = 48  ;;  %s851_s21 = sshll.u32 (!%p326_p11), %s1282_s15, 2 }
  0x2a   : > { %s332_s13 = scalar_lea.sflag (!%p326_p11), [#allocation5], %s1282_s15  ;;  %s335_s25 = scalar_lea.vmem (!%p326_p11), [#allocation4], %s851_s21 }
  0x2e   : > { %1106 = dma.done.wait (%p1243_p8), %s332_s13, 64  }
  0x2f   : > { %1108 = vsyncadd (%p1243_p8), %s332_s13, 4294967232  ;;  %s852_s26 = sshll.u32 %s1282_s15, 3  ;;  %s854_s11 = sshll.u32 %s1131_s30, 2  ;;  %vm397_vm0 = vcmask 261120   ;;  %vm399_vm1 = vcmask 64512   ;;  %v1146_v0 = vmov 0.0  }
  0x30   : > { %398 = vst.msk [vmem:[#allocation2] sm:$0xff] %vm397_vm0, %v1146_v0  ;;  %p384_p11 = scmp.lt.s32.totalorder %s854_s11, 7  ;;  %v1294_v1 = vld [vmem:[%s335_s25] sm:$0xf]  ;;  %s1306_s21 = scalar_lea.vmem [#allocation7], %s852_s26 }
  0x31   : > { %400 = vst.msk [vmem:[#allocation3] sm:$0xff] %vm399_vm1, %v1146_v0  ;;  %s1308_s13 = scalar_lea.vmem [#allocation8], %s852_s26  ;;  %s1310_s0 = smov 0  }
  0x32   : > { %s1465_s11 = smov (!%p384_p11, %s854_s11), 7 }
  0x33   : > { %s855_s16 = sshll.u32 %s1465_s11, 2 }
  0x34   : > { %s1299_s17 = scalar_lea.vmem %s1437_s1, %s855_s16  ;;  %s1304_s22 = scalar_lea.vmem %s1438_s2, %s855_s16 }
  0x35 LB: >> { %v1147_v2 = vmov 0.0   ;;  %vm1148_vm2 = vmmov 0   ;;  %s877_s25 = sshll.u32 %s1143_s0, 4  ;;  %s1325_s12 = sshll.u32 %s1143_s0, 2  ;;  %vm484_vm3 = vcmask 1043456   ;;  %s1143_s0 = sphi %s1310_s0, %s406_s0  }
  0x36   : >> { %887 = vmatprep.subr.bf16.mxu0 %v1147_v2  ;;  %891 = vmatprep.mubr.msk.bf16.mxu0 %vm1148_vm2, %v1147_v2  ;;  %s409_s16 = scalar_lea.vmem %s1439_s3, %s877_s25  ;;  %s479_s14 = scalar_lea.vmem %s1299_s17, %s1325_s12 }
  0x37   : >> { %895 = vmatprep.subr.bf16.mxu1 %v1147_v2  ;;  %897 = vmatprep.mubr.msk.bf16.mxu1 %vm1148_vm2, %v1147_v2  ;;  %v991_v3 = vld [vmem:[%s409_s16 + $0x8] sm:$0xff]   ;;  %v992_v4 = vld [vmem:[%s409_s16] sm:$0xff]   ;;  %s414_s25 = scalar_lea.vmem %s1440_s4, %s1143_s0  ;;  %s542_s26 = scalar_lea.vmem %s1304_s22, %s1325_s12 }
  0x38   : >> { %888 = vmatpush3.bf16.msra.mxu0 %v991_v3  ;;  %v480_v5 = vld [vmem:[%s479_s14] sm:$0xf]  ;;  %s593_s14 = scalar_lea.vmem %s1441_s5, %s1325_s12  ;;  %v643_v30 = vld [vmem:[#allocation3] sm:$0xff]  ;;  %s406_s0 = sadd.s32 1, %s1143_s0  }
  0x39   : >> { %889 = vmatprep.subr.bf16.mxu0 %v1147_v2  ;;  %v486_v6 = vsel %vm484_vm3, %v480_v5, 0  ;;  %v860_v7 = vld [vmem:[%s414_s25] ss:$0 sm:$0xff]  ;;  %p403_p8 = scmp.ge.s32.totalorder %s406_s0, 4  }
  0x3a   : >> { %896 = vmatpush3.bf16.msra.mxu1 %v486_v6  ;;  %v543_v24 = vld [vmem:[%s542_s26] sm:$0xf]  ;;  %s873_s23 = sshll.u32 (%p403_p8), %s1131_s30, 7  ;;  %s679_s17 = sshll.u32 (%p403_p8), %s1306_s21, 4  ;;  %s1363_s17 = int_to_ptr.vmem [resolvable:$true] %s679_s17 }
  0x3b   : >> { %901 = vmatprep.subr.bf16.mxu1 %v1147_v2  ;;  %v548_v25 = vsel %vm484_vm3, %v543_v24, 0  ;;  %v594_v26 = vld [vmem:[%s593_s14] sm:$0xf]  ;;  %s1360_s0 = scalar_lea.hbm (%p403_p8), %s1443_s7, %s873_s23  ;;  %s1372_s30 = scalar_lea.hbm (%p403_p8), %s1444_s8, %s873_s23 }
  0x3c   : >> { %890 = vmatpush3.bf16.msra.mxu0 %v992_v4  ;;  %v599_v27 = vsel %vm484_vm3, %v594_v26, 0  ;;  %v590_v39 = vld [vmem:[#allocation2] sm:$0xff]  ;;  %s693_s16 = sshll.u32 (%p403_p8), %s1308_s13, 4  ;;  %s660_s14 = scalar_lea.sflag (%p403_p8), [#allocation6], %s1282_s15  ;;  %s694_s16 = int_to_ptr.vmem [resolvable:$true] %s693_s16 }
  0x3d   : >> { %907 = vmatprep.subr.bf16.mxu0 %v1147_v2  ;;  %v870_v46 = vld [vmem:[%s1442_s6] ss:$0 sm:$0xff] (%p403_p8)  ;;  %s1025_s12 = scalar_lea.vmem (%p403_p8), %s1363_s17, 128  ;;  %s1149_s24 = smov (%p403_p8), [#allocation7]  }
  0x3e   : > { %p1026_p12 = scmp.ne.s32.totalorder (%p403_p8), %s1363_s17, %s1025_s12  ;;  %s1029_s25 = sshll.u32 (%p403_p8), %s1149_s24, 4  ;;  %s1030_s25 = int_to_ptr.vmem [resolvable:$false] %s1029_s25 }
  0x3f   : >> { %892 = vmatmul.mubr.msk.bf16.vlgmr.msra.gmra.mxu0 %vm397_vm0, %v1294_v1  ;;  %s1031_s26 = scalar_lea.vmem (%p403_p8), %s1030_s25, 256  ;;  %p1032_p2 = scmp.lt.s32.totalorder (%p403_p8), %s1363_s17, %s1030_s25 }
  0x40   : >> { %909 = vmatprep.mubr.msk.bf16.mxu0 %vm1148_vm2, %v1147_v2  ;;  %908 = vmatpush3.bf16.msra.mxu0 %v599_v27  ;;  %p1027_p0 = pnand (%p403_p8), %p1026_p12, %p1247_p9  ;;  %p1033_p3 = scmp.lt.s32.totalorder (%p403_p8), %s1031_s26, %s1025_s12 }
  0x42   : > { %p1028_p1 = pneg (%p403_p8), %p1027_p0  ;;  %p1034_p5 = por (%p403_p8), %p1033_p3, %p1032_p2 }
  0x44   : > { %p1035_p6 = pnand (%p403_p8), %p1034_p5, %p1028_p1 }
  0xff   : >> { %v471_v8 = vpop.f32.mrf.mxu0 }
 0x100   : >> { %v472_v9 = vadd.f32 %v860_v7, %v471_v8 }
 0x101   : >> { %v893_v10 = vpop.f32.mrf.mxu0 }
 0x102   : >> { %v477_v11 = vpack.c.bf16 %v472_v9, %v472_v9 }
 0x103   : >> { %v474_v12 = vpop.f32.mrf.mxu0 }
 0x104   : >> { %898 = vmatmul.mubr.msk.bf16.vlgmr.msra.gmra.mxu1 %vm399_vm1, %v477_v11 }
 0x105   : >> { %v894_v13 = vpop.f32.mrf.mxu0  ;;  %903 = vmatprep.mubr.msk.bf16.mxu1 %vm1148_vm2, %v1147_v2  ;;  %902 = vmatpush3.bf16.msra.mxu1 %v548_v25 }
 0x1c4   : >> { %v522_v14 = vpop.f32.mrf.mxu1 }
 0x1c5   : >> { %v528_v15 = vsel %vm399_vm1, %v522_v14, -inf }
 0x1c6   : >> { %529 = vmax.xlane.f32.xlu0 %v528_v15  ;;  %v899_v16 = vpop.f32.mrf.mxu1 }
 0x1c8   : >> { %v525_v17 = vpop.f32.mrf.mxu1 }
 0x1ca   : >> { %v900_v18 = vpop.f32.mrf.mxu1 }
 0x24f   : >> { %v530_v19 = vpop.xlane.xlu0 %529 }
 0x250   : >> { %v531_v20 = vsub.f32 %v522_v14, %v530_v19 }
 0x252   : >> { %v532_v21 = vmul.f32 1.442695, %v531_v20 }
 0x254   : >> { %993 = vpow2.f32 %v532_v21 }
 0x261   : >> { %v994_v22 = vpop.eup %993 }
 0x262   : >> { %v534_v23 = vsel %vm399_vm1, %v994_v22, 0.0 }
 0x263   : >> { %535 = vadd.xlane.f32.xlu0 %v534_v23 }
 0x2ec   : >> { %v536_v28 = vpop.xlane.xlu0 %535 }
 0x2ed   : >> { %995 = vrcp.f32 %v536_v28 }
 0x2fa   : >> { %v996_v29 = vpop.eup %995 }
 0x2fb   : >> { %v539_v31 = vmul.f32 %v996_v29, %v994_v22 }
 0x2fd   : >> { %v540_v32 = vpack.c.bf16 %v539_v31, %v539_v31  ;;  %v644_v33 = vadd.f32 %v643_v30, %v539_v31 }
 0x2ff   : >> { %904 = vmatmul.mubr.msk.bf16.vlgmr.msra.gmra.mxu1 %vm399_vm1, %v540_v32  ;;  %645 = vst.msk [vmem:[#allocation3] sm:$0xff] %vm399_vm1, %v644_v33 }
 0x306   : > { %v656_v47 = vld [vmem:[#allocation3] sm:$0xff] (%p403_p8) }
 0x307   : > { %v657_v49 = vmul.f32 (%p403_p8), 0.25, %v656_v47 }
 0x309   : > { %658 = vst.msk [vmem:[%s1308_s13] sm:$0xff] (%p403_p8), %vm399_vm1, %v657_v49 }
 0x3bf   : >> { %v584_v34 = vpop.f32.mrf.mxu1 }
 0x3c0   : >> { %v591_v35 = vpack.c.bf16 %v584_v34, %v584_v34 }
 0x3c1   : >> { %v905_v36 = vpop.f32.mrf.mxu1 }
 0x3c2   : >> { %910 = vmatmul.mubr.msk.bf16.vlgmr.msra.gmra.mxu0 %vm399_vm1, %v591_v35 }
 0x3c3   : >> { %v587_v37 = vpop.f32.mrf.mxu1 }
 0x3c5   : >> { %v906_v38 = vpop.f32.mrf.mxu1 }
 0x482   : >> { %v635_v40 = vpop.f32.mrf.mxu0 }
 0x483   : >> { %v641_v41 = vadd.f32 %v635_v40, %v590_v39 }
 0x484   : >> { %v911_v42 = vpop.f32.mrf.mxu0  ;;  %405 = sbr.rel (!%p403_p8) target bundleno = 53 (0x35), region = 128 }
 0x485   : >> { %642 = vst.msk [vmem:[#allocation2] sm:$0xff] %vm397_vm0, %v641_v41 }
 0x486   : >> { %v638_v43 = vpop.f32.mrf.mxu0 }
 0x488   : >> { %v912_v44 = vpop.f32.mrf.mxu0 }
 0x48c   : > { %v646_v45 = vld [vmem:[#allocation2] sm:$0xff] }
 0x48d   : > { %v654_v48 = vadd.f32 %v870_v46, %v646_v45 }
 0x48f   : > { %655 = vst.msk [vmem:[%s1306_s21] sm:$0xff] %vm397_vm0, %v654_v48 }
 0x490   : > { %1038 = shalt.err (!%p1035_p6)
}
 0x491   : > { %s1039_s21 = scalar_lea.hbm %s1360_s0, 128  ;;  %s1043_s22 = scalar_lea.hbm %s1443_s7, 256 }
 0x492   : > { %p1040_p7 = scmp.ne.s32.totalorder %s1360_s0, %s1039_s21  ;;  %p1044_p13 = scmp.lt.s32.totalorder %s1360_s0, %s1443_s7 }
 0x493   : > { %p1045_p11 = scmp.lt.s32.totalorder %s1043_s22, %s1039_s21 }
 0x494   : > { %p1041_p10 = pnand %p1040_p7, %p1247_p9 }
 0x495   : > { %p1046_p8 = por %p1045_p11, %p1044_p13 }
 0x496   : > { %p1042_p4 = pneg %p1041_p10 }
 0x498   : > { %p1047_p12 = pnand %p1046_p8, %p1042_p4 }
 0x49a   : > { %1050 = shalt.err (!%p1047_p12)
}
 0x49b   : > { %915 = dma.vmem_to_hbm [thread:$0]  (%p1247_p9), %s1363_s17, 128, %s1360_s0, %s660_s14  }
 0x49c   : > { %s665_s12 = scalar_lea.sflag [#allocation9], %s1282_s15  ;;  %s1051_s25 = scalar_lea.vmem %s694_s16, 128 }
 0x49d   : > { %p1052_p0 = scmp.ne.s32.totalorder %s694_s16, %s1051_s25  ;;  %s1150_s26 = smov [#allocation8]  }
 0x49e   : > { %s1055_s13 = sshll.u32 %s1150_s26, 4  ;;  %s1056_s13 = int_to_ptr.vmem [resolvable:$false] %s1055_s13 }
 0x49f   : > { %p1053_p1 = pnand %p1052_p0, %p1247_p9  ;;  %s1057_s21 = scalar_lea.vmem %s1056_s13, 256 }
 0x4a0   : > { %p1058_p3 = scmp.lt.s32.totalorder %s694_s16, %s1056_s13  ;;  %p1059_p5 = scmp.lt.s32.totalorder %s1057_s21, %s1051_s25 }
 0x4a1   : > { %p1054_p2 = pneg %p1053_p1 }
 0x4a2   : > { %p1060_p6 = por %p1059_p5, %p1058_p3 }
 0x4a4   : > { %p1061_p7 = pnand %p1060_p6, %p1054_p2 }
 0x4a6   : > { %1064 = shalt.err (!%p1061_p7)
}
 0x4a7   : > { %s1065_s0 = scalar_lea.hbm %s1372_s30, 128  ;;  %s1069_s14 = scalar_lea.hbm %s1444_s8, 256 }
 0x4a8   : > { %p1066_p10 = scmp.ne.s32.totalorder %s1372_s30, %s1065_s0  ;;  %p1070_p11 = scmp.lt.s32.totalorder %s1372_s30, %s1444_s8 }
 0x4a9   : > { %p1071_p8 = scmp.lt.s32.totalorder %s1069_s14, %s1065_s0 }
 0x4aa   : > { %p1067_p4 = pnand %p1066_p10, %p1247_p9 }
 0x4ab   : > { %p1072_p12 = por %p1071_p8, %p1070_p11 }
 0x4ac   : > { %p1068_p13 = pneg %p1067_p4 }
 0x4ae   : > { %p1073_p0 = pnand %p1072_p12, %p1068_p13 }
 0x4b0   : > { %1076 = shalt.err (!%p1073_p0)
}
 0x4b1   : > { %916 = dma.vmem_to_hbm [thread:$0]  (%p1247_p9), %s694_s16, 128, %s1372_s30, %s665_s12  }
 0x4b2 PF: > { %s705_s11 = sand.u32 1, %s1119_s27   ;;  %p1454_p1 = scmp.ne.s32.totalorder %s1451_s20, 0 }
 0x4b3   : > { %p1455_p2 = scmp.ge.s32.totalorder %s1139_s10, 2  ;;  %s706_s24 = scalar_lea.sflag [#allocation6], %s705_s11 }
 0x4b5   : > { %p924_p3 = pnand %p1455_p2, %p1454_p1 }
 0x4b7   : > { %p925_p5 = pneg %p924_p3 }
 0x4b9   : > { %1110 = dma.done.wait (%p925_p5), %s706_s24, 128  }
 0x4ba   : > { %1112 = vsyncadd (%p925_p5), %s706_s24, 4294967168  ;;  %s715_s25 = scalar_lea.sflag [#allocation9], %s705_s11 }
 0x4bb   : > { %1114 = dma.done.wait (%p925_p5), %s715_s25, 128  }
 0x4bc   : > { %1116 = vsyncadd (%p925_p5), %s715_s25, 4294967168  ;;  %s28_s10 = sadd.s32 1, %s1139_s10   ;;  %s1456_s18 = sld [smem:[#allocation13_spill]] }
 0x4bd   : > { %p25_p6 = scmp.ge.s32.totalorder %s28_s10, 4   ;;  %s1457_s27 = smov %s1123_s28 }
 0x4be   : > { %s1458_s28 = smov %s1127_s29  ;;  %s1459_s29 = smov %s1252_s19 }
 0x4bf   : > { %s1460_s30 = smov %s1135_s9  ;;  %27 = sbr.rel (!%p25_p6) target bundleno = 10 (0xa), region = 139 }
 0x4c2   : > { %s1461_s9 = smov %s1456_s18 }
 0x4c4   :  { %720 = vsyncpa [#allocation5], 1 }
 0x4c5   :  { %722 = vsyncpa [#allocation5 + $0x1], 1 }
 0x4c6   :  { %723 = vsyncpa [#allocation6], 1 }
 0x4c7   :  { %725 = vsyncpa [#allocation6 + $0x1], 1 }
 0x4c8   :  { %726 = vsyncpa [#allocation9], 1 }
 0x4c9   :  { %728 = vsyncpa [#allocation9 + $0x1], 1 }

</bundles_post_ra>
